<compile_context>
chip_gen: v6e
topology: v6e:2x2x1
jax: 0.10.0
libtpu: 0.0.40
codegen_flags: <defaults>
</compile_context>

<pallas_src>
import functools

import jax
import jax.numpy as jnp
from jax.experimental import pallas as pl
from jax.experimental.pallas import tpu as pltpu

IN_DIM = 784
HIDDEN = 200
NUM_CLASSES = 10

HIDDEN_PAD = 256   # lane-dense hidden width
CLASS_PAD = 128    # lane-dense output width

DEFAULT_TILE_B = 1024
NEG_BIG = -1e30    # finite "minus infinity" for padded class logits


def _round_up(n, m):
    return ((n + m - 1) // m) * m


def twonn_kernel(x_ref, w1_ref, b1_ref, w2_ref, b2_ref, w3_ref, b3_ref, o_ref):
    # Layer 1: bf16 x bf16 matmul, f32 accumulate, f32 bias + ReLU.
    h1 = jnp.dot(x_ref[...], w1_ref[...],
                 preferred_element_type=jnp.float32) + b1_ref[...]
    h1 = jnp.maximum(h1, 0.0)

    # Layer 2.
    h2 = jnp.dot(h1.astype(jnp.bfloat16), w2_ref[...],
                 preferred_element_type=jnp.float32) + b2_ref[...]
    h2 = jnp.maximum(h2, 0.0)

    # Layer 3: padded class lanes carry a -1e30 bias (w3 pad columns are 0),
    # so they get exactly zero probability below -- no in-kernel masking.
    logits = jnp.dot(h2.astype(jnp.bfloat16), w3_ref[...],
                     preferred_element_type=jnp.float32) + b3_ref[...]

    # Numerically stable softmax over dim=1 (class axis), exact normalization.
    m = jnp.max(logits, axis=1, keepdims=True)
    e = jnp.exp(logits - m)
    denom = jnp.sum(e, axis=1, keepdims=True)
    o_ref[...] = (e / denom).astype(o_ref.dtype)


def _pad_params(params):
    """Zero-pad hidden 200->256 / class 10->128; weights -> bf16, biases f32.

    Padded class lanes of b3 are set to -1e30 so they softmax to 0.
    """
    w1 = jnp.pad(params["w1"], ((0, 0), (0, HIDDEN_PAD - HIDDEN))).astype(jnp.bfloat16)
    b1 = jnp.pad(params["b1"], ((0, 0), (0, HIDDEN_PAD - HIDDEN)))
    w2 = jnp.pad(params["w2"], ((0, HIDDEN_PAD - HIDDEN),
                                (0, HIDDEN_PAD - HIDDEN))).astype(jnp.bfloat16)
    b2 = jnp.pad(params["b2"], ((0, 0), (0, HIDDEN_PAD - HIDDEN)))
    w3 = jnp.pad(params["w3"], ((0, HIDDEN_PAD - HIDDEN),
                                (0, CLASS_PAD - NUM_CLASSES))).astype(jnp.bfloat16)
    b3 = jnp.pad(params["b3"], ((0, 0), (0, CLASS_PAD - NUM_CLASSES)),
                 constant_values=NEG_BIG)
    return w1, b1, w2, b2, w3, b3


@functools.partial(jax.jit, static_argnames=("tile_b",))
def twonn_forward(x, params, tile_b=DEFAULT_TILE_B):
    """x: (B, 784) float32. params: dict of (in, out) weights & (1, out) biases."""
    B = x.shape[0]

    # Batch tile: multiple of 8, no bigger than ceil(B/2) rounded up (so we
    # get >=2 grid steps whenever B >= 16 -> both v7x TensorCores busy), and
    # no bigger than the requested tile.
    half = _round_up(-(-B // 2), 8)
    tb = max(8, min(tile_b, half))
    Bp = _round_up(B, tb)

    x = x.astype(jnp.bfloat16)
    if Bp != B:
        x = jnp.pad(x, ((0, Bp - B), (0, 0)))

    w1, b1, w2, b2, w3, b3 = _pad_params(params)

    num_tiles = Bp // tb
    resident = lambda a: pl.BlockSpec(a.shape, lambda i: (0, 0))

    out = pl.pallas_call(
        twonn_kernel,
        out_shape=jax.ShapeDtypeStruct((Bp, CLASS_PAD), jnp.float32),
        grid=(num_tiles,),
        in_specs=[
            pl.BlockSpec((tb, IN_DIM), lambda i: (i, 0)),   # x: batch-tiled
            resident(w1), resident(b1),                      # weights/biases: pinned
            resident(w2), resident(b2),
            resident(w3), resident(b3),
        ],
        out_specs=pl.BlockSpec((tb, CLASS_PAD), lambda i: (i, 0)),
        compiler_params=pltpu.CompilerParams(
            dimension_semantics=("parallel",),
            vmem_limit_bytes=32 * 1024 * 1024,
        ),
    )(x, w1, b1, w2, b2, w3, b3)

    return out[:B, :NUM_CLASSES]


def init_params(key):
    """Deterministic init mimicking torch.nn.Linear (weights kept as (in, out))."""
    ks = jax.random.split(key, 6)

    def linear(kw, kb, fan_in, fan_out):
        bound = 1.0 / jnp.sqrt(fan_in)
        w = jax.random.uniform(kw, (fan_in, fan_out), jnp.float32, -bound, bound)
        b = jax.random.uniform(kb, (1, fan_out), jnp.float32, -bound, bound)
        return w, b

    w1, b1 = linear(ks[0], ks[1], IN_DIM, HIDDEN)
    w2, b2 = linear(ks[2], ks[3], HIDDEN, HIDDEN)
    w3, b3 = linear(ks[4], ks[5], HIDDEN, NUM_CLASSES)
    return {"w1": w1, "b1": b1, "w2": w2, "b2": b2, "w3": w3, "b3": b3}


def twonn_ref(x, p):
    """Pure-JAX f32 reference for correctness checks."""
    h1 = jnp.maximum(x @ p["w1"] + p["b1"], 0.0)
    h2 = jnp.maximum(h1 @ p["w2"] + p["b2"], 0.0)
    logits = h2 @ p["w3"] + p["b3"]
    return jax.nn.softmax(logits, axis=1)


if __name__ == "__main__":
    key = jax.random.PRNGKey(0)
    k_param, k_x1, k_x2 = jax.random.split(key, 3)

    params = init_params(k_param)

    # Small-batch check (single tile, tb clamps to 8).
    batch = 8
    x_small = jax.random.normal(k_x1, (batch, IN_DIM), jnp.float32)
    out_small = jax.block_until_ready(twonn_forward(x_small, params))
    ref_small = twonn_ref(x_small, params)
    assert out_small.shape == (batch, NUM_CLASSES)
    # bf16 matmul inputs vs f32 reference -> loose probability tolerance.
    assert jnp.allclose(out_small, ref_small, atol=2e-2, rtol=2e-2), "mismatch (small)"
    # Normalization is an exact f32 divide -> rows sum to 1 tightly.
    assert jnp.allclose(jnp.sum(out_small, axis=1), 1.0, atol=1e-3), "rows must sum to 1"

    # Multi-tile check with batch padding (B=200, tile_b=64 -> 4 tiles, pad to 256).
    x_big = jax.random.normal(k_x2, (200, IN_DIM), jnp.float32)
    out_big = jax.block_until_ready(twonn_forward(x_big, params, tile_b=64))
    ref_big = twonn_ref(x_big, params)
    assert out_big.shape == (200, NUM_CLASSES)
    assert jnp.allclose(out_big, ref_big, atol=2e-2, rtol=2e-2), "mismatch (tiled)"
    assert jnp.allclose(jnp.sum(out_big, axis=1), 1.0, atol=1e-3), "rows must sum to 1"

    print("KERNEL_OK")
</pallas_src>

<mosaic_0001>
module attributes {stable_mosaic.version = 11 : i64} {
  func.func @twonn_kernel(%arg0: i32, %arg1: memref<8x784xbf16, #tpu.memory_space<vmem>>, %arg2: memref<784x256xbf16, #tpu.memory_space<vmem>>, %arg3: memref<1x256xf32, #tpu.memory_space<vmem>>, %arg4: memref<256x256xbf16, #tpu.memory_space<vmem>>, %arg5: memref<1x256xf32, #tpu.memory_space<vmem>>, %arg6: memref<256x128xbf16, #tpu.memory_space<vmem>>, %arg7: memref<1x128xf32, #tpu.memory_space<vmem>>, %arg8: memref<8x128xf32, #tpu.memory_space<vmem>>) attributes {dimension_semantics = [#tpu.dimension_semantics<parallel>], iteration_bounds = array<i64: 1>, scalar_prefetch = 0 : i64, scratch_operands = 0 : i64, tpu.core_type = #tpu.core_type<tc>, window_params = [{transform_indices = @transform_0, window_bounds = array<i64: 8, 784>}, {pipeline_mode = #tpu.pipeline_mode<synchronous>, transform_indices = @transform_1, window_bounds = array<i64: 784, 256>}, {pipeline_mode = #tpu.pipeline_mode<synchronous>, transform_indices = @transform_2, window_bounds = array<i64: 1, 256>}, {pipeline_mode = #tpu.pipeline_mode<synchronous>, transform_indices = @transform_3, window_bounds = array<i64: 256, 256>}, {pipeline_mode = #tpu.pipeline_mode<synchronous>, transform_indices = @transform_4, window_bounds = array<i64: 1, 256>}, {pipeline_mode = #tpu.pipeline_mode<synchronous>, transform_indices = @transform_5, window_bounds = array<i64: 256, 128>}, {pipeline_mode = #tpu.pipeline_mode<synchronous>, transform_indices = @transform_6, window_bounds = array<i64: 1, 128>}, {transform_indices = @transform_7, window_bounds = array<i64: 8, 128>}]} {
    %c0 = arith.constant 0 : index
    %c0_0 = arith.constant 0 : index
    %0 = vector.load %arg1[%c0, %c0_0] : memref<8x784xbf16, #tpu.memory_space<vmem>>, vector<8x784xbf16>
    %c0_1 = arith.constant 0 : index
    %c0_2 = arith.constant 0 : index
    %1 = vector.load %arg2[%c0_1, %c0_2] : memref<784x256xbf16, #tpu.memory_space<vmem>>, vector<784x256xbf16>
    %cst = arith.constant dense<0.000000e+00> : vector<8x256xf32>
    %2 = tpu.matmul %0, %1, %cst {dimension_numbers = #tpu.dot_dimension_numbers<[1], [0], [0], [1], [0, 0, 1, 1], [], []>} : vector<8x784xbf16>, vector<784x256xbf16>, vector<8x256xf32> -> vector<8x256xf32>
    %c0_3 = arith.constant 0 : index
    %c0_4 = arith.constant 0 : index
    %3 = vector.load %arg3[%c0_3, %c0_4] : memref<1x256xf32, #tpu.memory_space<vmem>>, vector<1x256xf32>
    %4 = vector.broadcast %3 : vector<1x256xf32> to vector<8x256xf32>
    %5 = arith.addf %2, %4 : vector<8x256xf32>
    %cst_5 = arith.constant 0.000000e+00 : f32
    %6 = vector.broadcast %cst_5 : f32 to vector<8x256xf32>
    %7 = arith.maximumf %5, %6 : vector<8x256xf32>
    %8 = arith.truncf %7 : vector<8x256xf32> to vector<8x256xbf16>
    %c0_6 = arith.constant 0 : index
    %c0_7 = arith.constant 0 : index
    %9 = vector.load %arg4[%c0_6, %c0_7] : memref<256x256xbf16, #tpu.memory_space<vmem>>, vector<256x256xbf16>
    %cst_8 = arith.constant dense<0.000000e+00> : vector<8x256xf32>
    %10 = tpu.matmul %8, %9, %cst_8 {dimension_numbers = #tpu.dot_dimension_numbers<[1], [0], [0], [1], [0, 0, 1, 1], [], []>} : vector<8x256xbf16>, vector<256x256xbf16>, vector<8x256xf32> -> vector<8x256xf32>
    %c0_9 = arith.constant 0 : index
    %c0_10 = arith.constant 0 : index
    %11 = vector.load %arg5[%c0_9, %c0_10] : memref<1x256xf32, #tpu.memory_space<vmem>>, vector<1x256xf32>
    %12 = vector.broadcast %11 : vector<1x256xf32> to vector<8x256xf32>
    %13 = arith.addf %10, %12 : vector<8x256xf32>
    %cst_11 = arith.constant 0.000000e+00 : f32
    %14 = vector.broadcast %cst_11 : f32 to vector<8x256xf32>
    %15 = arith.maximumf %13, %14 : vector<8x256xf32>
    %16 = arith.truncf %15 : vector<8x256xf32> to vector<8x256xbf16>
    %c0_12 = arith.constant 0 : index
    %c0_13 = arith.constant 0 : index
    %17 = vector.load %arg6[%c0_12, %c0_13] : memref<256x128xbf16, #tpu.memory_space<vmem>>, vector<256x128xbf16>
    %cst_14 = arith.constant dense<0.000000e+00> : vector<8x128xf32>
    %18 = tpu.matmul %16, %17, %cst_14 {dimension_numbers = #tpu.dot_dimension_numbers<[1], [0], [0], [1], [0, 0, 1, 1], [], []>} : vector<8x256xbf16>, vector<256x128xbf16>, vector<8x128xf32> -> vector<8x128xf32>
    %c0_15 = arith.constant 0 : index
    %c0_16 = arith.constant 0 : index
    %19 = vector.load %arg7[%c0_15, %c0_16] : memref<1x128xf32, #tpu.memory_space<vmem>>, vector<1x128xf32>
    %20 = vector.broadcast %19 : vector<1x128xf32> to vector<8x128xf32>
    %21 = arith.addf %18, %20 : vector<8x128xf32>
    %cst_17 = arith.constant dense<0xFF800000> : vector<8xf32>
    %22 = vector.multi_reduction <maximumf>, %21, %cst_17 [1] : vector<8x128xf32> to vector<8xf32>
    %23 = vector.shape_cast %22 : vector<8xf32> to vector<8x1xf32>
    %24 = vector.broadcast %23 : vector<8x1xf32> to vector<8x128xf32>
    %25 = arith.subf %21, %24 : vector<8x128xf32>
    %26 = math.exp %25 : vector<8x128xf32>
    %cst_18 = arith.constant dense<0.000000e+00> : vector<8xf32>
    %27 = vector.multi_reduction <add>, %26, %cst_18 [1] : vector<8x128xf32> to vector<8xf32>
    %28 = vector.shape_cast %27 : vector<8xf32> to vector<8x1xf32>
    %29 = vector.broadcast %28 : vector<8x1xf32> to vector<8x128xf32>
    %30 = arith.divf %26, %29 : vector<8x128xf32>
    %c0_19 = arith.constant 0 : index
    %c0_20 = arith.constant 0 : index
    %31 = vector.load %arg8[%c0_19, %c0_20] : memref<8x128xf32, #tpu.memory_space<vmem>>, vector<8x128xf32>
    tpu.vector_store %arg8[%c0_19, %c0_20], %30 {strides = array<i32>} : memref<8x128xf32, #tpu.memory_space<vmem>>, vector<8x128xf32>,
    return
  }
  func.func @transform_0(%arg0: i32) -> (i32, i32) {
    %c0_i32 = arith.constant 0 : i32
    %c0_i32_0 = arith.constant 0 : i32
    return %arg0, %c0_i32 : i32, i32
  }
  func.func @transform_1(%arg0: i32) -> (i32, i32) {
    %c0_i32 = arith.constant 0 : i32
    %c0_i32_0 = arith.constant 0 : i32
    %c0_i32_1 = arith.constant 0 : i32
    return %c0_i32, %c0_i32_0 : i32, i32
  }
  func.func @transform_2(%arg0: i32) -> (i32, i32) {
    %c0_i32 = arith.constant 0 : i32
    %c0_i32_0 = arith.constant 0 : i32
    %c0_i32_1 = arith.constant 0 : i32
    return %c0_i32, %c0_i32_0 : i32, i32
  }
  func.func @transform_3(%arg0: i32) -> (i32, i32) {
    %c0_i32 = arith.constant 0 : i32
    %c0_i32_0 = arith.constant 0 : i32
    %c0_i32_1 = arith.constant 0 : i32
    return %c0_i32, %c0_i32_0 : i32, i32
  }
  func.func @transform_4(%arg0: i32) -> (i32, i32) {
    %c0_i32 = arith.constant 0 : i32
    %c0_i32_0 = arith.constant 0 : i32
    %c0_i32_1 = arith.constant 0 : i32
    return %c0_i32, %c0_i32_0 : i32, i32
  }
  func.func @transform_5(%arg0: i32) -> (i32, i32) {
    %c0_i32 = arith.constant 0 : i32
    %c0_i32_0 = arith.constant 0 : i32
    %c0_i32_1 = arith.constant 0 : i32
    return %c0_i32, %c0_i32_0 : i32, i32
  }
  func.func @transform_6(%arg0: i32) -> (i32, i32) {
    %c0_i32 = arith.constant 0 : i32
    %c0_i32_0 = arith.constant 0 : i32
    %c0_i32_1 = arith.constant 0 : i32
    return %c0_i32, %c0_i32_0 : i32, i32
  }
  func.func @transform_7(%arg0: i32) -> (i32, i32) {
    %c0_i32 = arith.constant 0 : i32
    %c0_i32_0 = arith.constant 0 : i32
    return %arg0, %c0_i32 : i32, i32
  }
}

</mosaic_0001>

<bundles_post_ra>
// kernel: twonn_forward.1
= control target key start
LH: loop header
LB: loop body
LE: loop exit
PB: predicated region body
PF: predicated region fallthrough
CT: control target
= control target key end

     0   :  { %vm656_vm0 = vcmask 130048   ;;  %s2209_s0 = inlined_call_operand.vmem [shape: bf16[8,784], index: 0, kind: input, shape index: {}]   ;;  %s2210_s1 = inlined_call_operand.vmem [shape: bf16[784,256], index: 1, kind: input, shape index: {}]   ;;  %s2211_s2 = inlined_call_operand.vmem [shape: f32[1,256], index: 2, kind: input, shape index: {}]   ;;  %s2212_s3 = inlined_call_operand.vmem [shape: bf16[256,256], index: 3, kind: input, shape index: {}]   ;;  %s2213_s4 = inlined_call_operand.vmem [shape: f32[1,256], index: 4, kind: input, shape index: {}]   ;;  %s2214_s5 = inlined_call_operand.vmem [shape: bf16[256,128], index: 5, kind: input, shape index: {}]   ;;  %s2215_s6 = inlined_call_operand.vmem [shape: f32[1,128], index: 6, kind: input, shape index: {}]   ;;  %s2216_s7 = inlined_call_operand.hbm [shape: f32[8,128], index: 7, kind: output, shape index: {}]  }
   0x1   :  { %v1455_v0 = vld [vmem:[%s2210_s1 + $0x74] ss:$8 sps:$4 sm:$0xff]   ;;  %v1457_v1 = vld [vmem:[%s2210_s1 + $0x70] ss:$8 sps:$4 sm:$0xff]   ;;  %v1461_v4 = vld [vmem:[%s2210_s1 + $0x64] ss:$8 sps:$4 sm:$0xff]  }
   0x2   :  { %660 = vmatprep.subr.bf16.mxu0 %v1455_v0  ;;  %v1458_v2 = vld [vmem:[%s2210_s1 + $0x174] ss:$8 sps:$4 sm:$0xff]   ;;  %v1460_v3 = vld [vmem:[%s2210_s1 + $0x170] ss:$8 sps:$4 sm:$0xff]   ;;  %v1463_v5 = vld [vmem:[%s2210_s1 + $0x60] ss:$8 sps:$4 sm:$0xff]  }
   0x3   :  { %661 = vmatpush1.bf16.msra.mxu0 %v1457_v1  ;;  %701 = vmatprep.subr.bf16.mxu1 %v1458_v2  ;;  %v1464_v6 = vld [vmem:[%s2210_s1 + $0x164] ss:$8 sps:$4 sm:$0xff]   ;;  %v1466_v7 = vld [vmem:[%s2210_s1 + $0x160] ss:$8 sps:$4 sm:$0xff]   ;;  %v1467_v8 = vld [vmem:[%s2210_s1 + $0x54] ss:$8 sps:$4 sm:$0xff]  }
   0x4   :  { %702 = vmatpush1.bf16.msra.mxu1 %v1460_v3  ;;  %662 = vmatprep.subr.bf16.mxu0 %v1461_v4  ;;  %v1469_v9 = vld [vmem:[%s2210_s1 + $0x50] ss:$8 sps:$4 sm:$0xff]   ;;  %v1470_v10 = vld [vmem:[%s2210_s1 + $0x154] ss:$8 sps:$4 sm:$0xff]   ;;  %v1473_v11 = vld [vmem:[%s2210_s1 + $0x44] ss:$8 sps:$4 sm:$0xff]  }
   0x5   :  { %703 = vmatprep.subr.bf16.mxu1 %v1464_v6  ;;  %v1472_v12 = vld [vmem:[%s2210_s1 + $0x150] ss:$8 sps:$4 sm:$0xff]   ;;  %v1476_v13 = vld [vmem:[%s2210_s1 + $0x144] ss:$8 sps:$4 sm:$0xff]   ;;  %v1475_v14 = vld [vmem:[%s2210_s1 + $0x40] ss:$8 sps:$4 sm:$0xff]  }
   0x6   :  { %v1479_v15 = vld [vmem:[%s2210_s1 + $0x34] ss:$8 sps:$4 sm:$0xff]   ;;  %v1478_v16 = vld [vmem:[%s2210_s1 + $0x140] ss:$8 sps:$4 sm:$0xff]   ;;  %v1481_v18 = vld [vmem:[%s2210_s1 + $0x30] ss:$8 sps:$4 sm:$0xff]  }
   0x7   :  { %663 = vmatpush1.bf16.msra.mxu0 %v1463_v5  ;;  %v1482_v17 = vld [vmem:[%s2210_s1 + $0x134] ss:$8 sps:$4 sm:$0xff]   ;;  %v1485_v19 = vld [vmem:[%s2210_s1 + $0x24] ss:$8 sps:$4 sm:$0xff]   ;;  %v1484_v20 = vld [vmem:[%s2210_s1 + $0x130] ss:$8 sps:$4 sm:$0xff]  }
   0x8   :  { %664 = vmatprep.subr.bf16.mxu0 %v1467_v8  ;;  %704 = vmatpush1.bf16.msra.mxu1 %v1466_v7  ;;  %v1488_v21 = vld [vmem:[%s2210_s1 + $0x124] ss:$8 sps:$4 sm:$0xff]   ;;  %v1487_v22 = vld [vmem:[%s2210_s1 + $0x20] ss:$8 sps:$4 sm:$0xff]   ;;  %v1491_v23 = vld [vmem:[%s2210_s1 + $0x14] ss:$8 sps:$4 sm:$0xff]  }
   0x9   :  { %705 = vmatprep.subr.bf16.mxu1 %v1470_v10  ;;  %v1490_v24 = vld [vmem:[%s2210_s1 + $0x120] ss:$8 sps:$4 sm:$0xff]   ;;  %v1494_v25 = vld [vmem:[%s2210_s1 + $0x114] ss:$8 sps:$4 sm:$0xff]   ;;  %v1493_v26 = vld [vmem:[%s2210_s1 + $0x10] ss:$8 sps:$4 sm:$0xff]  }
   0xa   :  { %v1497_v27 = vld [vmem:[%s2210_s1 + $0x4] ss:$8 sps:$4 sm:$0xff]   ;;  %v1496_v28 = vld [vmem:[%s2210_s1 + $0x110] ss:$8 sps:$4 sm:$0xff]   ;;  %v1499_v30 = vld [vmem:[%s2210_s1] ss:$8 sps:$4 sm:$0xff]  }
   0xb   :  { %665 = vmatpush1.bf16.msra.mxu0 %v1469_v9  ;;  %v1500_v29 = vld [vmem:[%s2210_s1 + $0x104] ss:$8 sps:$4 sm:$0xff]   ;;  %v1503_v31 = vld [vmem:[%s2210_s1 + $0xf4] ss:$8 sps:$4 sm:$0xff]   ;;  %v1502_v32 = vld [vmem:[%s2210_s1 + $0x100] ss:$8 sps:$4 sm:$0xff]  }
   0xc   :  { %666 = vmatprep.subr.bf16.mxu0 %v1473_v11  ;;  %706 = vmatpush1.bf16.msra.mxu1 %v1472_v12  ;;  %v1506_v33 = vld [vmem:[%s2210_s1 + $0x1f4] ss:$8 sps:$4 sm:$0xff]   ;;  %v1505_v34 = vld [vmem:[%s2210_s1 + $0xf0] ss:$8 sps:$4 sm:$0xff]   ;;  %v1509_v35 = vld [vmem:[%s2210_s1 + $0xe4] ss:$8 sps:$4 sm:$0xff]  }
   0xd   :  { %707 = vmatprep.subr.bf16.mxu1 %v1476_v13  ;;  %v1508_v36 = vld [vmem:[%s2210_s1 + $0x1f0] ss:$8 sps:$4 sm:$0xff]   ;;  %v1512_v37 = vld [vmem:[%s2210_s1 + $0x1e4] ss:$8 sps:$4 sm:$0xff]   ;;  %v1511_v38 = vld [vmem:[%s2210_s1 + $0xe0] ss:$8 sps:$4 sm:$0xff]  }
   0xe   :  { %v1515_v39 = vld [vmem:[%s2210_s1 + $0xd4] ss:$8 sps:$4 sm:$0xff]   ;;  %v1514_v40 = vld [vmem:[%s2210_s1 + $0x1e0] ss:$8 sps:$4 sm:$0xff]   ;;  %v1517_v42 = vld [vmem:[%s2210_s1 + $0xd0] ss:$8 sps:$4 sm:$0xff]  }
   0xf   :  { %667 = vmatpush1.bf16.msra.mxu0 %v1475_v14  ;;  %v1518_v41 = vld [vmem:[%s2210_s1 + $0x1d4] ss:$8 sps:$4 sm:$0xff]   ;;  %v1521_v43 = vld [vmem:[%s2210_s1 + $0xc4] ss:$8 sps:$4 sm:$0xff]   ;;  %v1520_v44 = vld [vmem:[%s2210_s1 + $0x1d0] ss:$8 sps:$4 sm:$0xff]  }
  0x10   :  { %668 = vmatprep.subr.bf16.mxu0 %v1479_v15  ;;  %708 = vmatpush1.bf16.msra.mxu1 %v1478_v16  ;;  %v1524_v45 = vld [vmem:[%s2210_s1 + $0x1c4] ss:$8 sps:$4 sm:$0xff]   ;;  %v1523_v47 = vld [vmem:[%s2210_s1 + $0xc0] ss:$8 sps:$4 sm:$0xff]   ;;  %v1527_v49 = vld [vmem:[%s2210_s1 + $0xb4] ss:$8 sps:$4 sm:$0xff]  }
  0x11   :  { %709 = vmatprep.subr.bf16.mxu1 %v1482_v17  ;;  %v28_v46 = vld [vmem:[%s2209_s0] sm:$0xff]  ;;  %v29_v50 = vld [vmem:[%s2209_s0 + $0x8] sm:$0xff]  ;;  %v1530_v53 = vld [vmem:[%s2210_s1 + $0x1b4] ss:$8 sps:$4 sm:$0xff]   ;;  %v1699_v16 = vmov 0  }
  0x12   :  { %v1277_v48 = vcombine.high %v28_v46, %v28_v46  ;;  %v1526_v51 = vld [vmem:[%s2210_s1 + $0x1c0] ss:$8 sps:$4 sm:$0xff]   ;;  %v1279_v52 = vcombine.high %v29_v50, %v29_v50  ;;  %v1529_v54 = vld [vmem:[%s2210_s1 + $0xb0] ss:$8 sps:$4 sm:$0xff]   ;;  %v1533_v55 = vld [vmem:[%s2210_s1 + $0xa4] ss:$8 sps:$4 sm:$0xff]   ;;  %v1276_v5 = vcombine.low %v28_v46, %v28_v46  ;;  %v1278_v7 = vcombine.low %v29_v50, %v29_v50 }
  0x13   :  { %669 = vmatpush1.bf16.msra.mxu0 %v1481_v18  ;;  %v1532_v56 = vld [vmem:[%s2210_s1 + $0x1b0] ss:$8 sps:$4 sm:$0xff]   ;;  %v1536_v57 = vld [vmem:[%s2210_s1 + $0x1a4] ss:$8 sps:$4 sm:$0xff]   ;;  %v1535_v58 = vld [vmem:[%s2210_s1 + $0xa0] ss:$8 sps:$4 sm:$0xff]  }
  0x14   :  { %670 = vmatprep.subr.bf16.mxu0 %v1485_v19  ;;  %710 = vmatpush1.bf16.msra.mxu1 %v1484_v20  ;;  %v1539_v59 = vld [vmem:[%s2210_s1 + $0x94] ss:$8 sps:$4 sm:$0xff]   ;;  %v1538_v60 = vld [vmem:[%s2210_s1 + $0x1a0] ss:$8 sps:$4 sm:$0xff]   ;;  %v1541_v62 = vld [vmem:[%s2210_s1 + $0x90] ss:$8 sps:$4 sm:$0xff]  }
  0x15   :  { %711 = vmatprep.subr.bf16.mxu1 %v1488_v21  ;;  %692 = vmatprep.mubr.bf16.mxu0 %v1277_v48  ;;  %v1542_v61 = vld [vmem:[%s2210_s1 + $0x194] ss:$8 sps:$4 sm:$0xff]   ;;  %v1545_v63 = vld [vmem:[%s2210_s1 + $0x84] ss:$8 sps:$4 sm:$0xff]   ;;  %v1544_v0 = vld [vmem:[%s2210_s1 + $0x190] ss:$8 sps:$4 sm:$0xff]  }
  0x16   :  { %733 = vmatprep.mubr.bf16.mxu1 %v1279_v52  ;;  %v1548_v1 = vld [vmem:[%s2210_s1 + $0x184] ss:$8 sps:$4 sm:$0xff]   ;;  %v1547_v2 = vld [vmem:[%s2210_s1 + $0x80] ss:$8 sps:$4 sm:$0xff]   ;;  %v1555_v3 = vld [vmem:[%s2210_s1 + $0x274] ss:$8 sps:$4 sm:$0xff]  }
  0x17   :  { %671 = vmatpush1.bf16.msra.mxu0 %v1487_v22  ;;  %v1552_v4 = vld [vmem:[%s2210_s1 + $0x180] ss:$8 sps:$4 sm:$0xff]   ;;  %v1553_v6 = vld [vmem:[%s2210_s1 + $0x270] ss:$8 sps:$4 sm:$0xff]   ;;  %v1560_v8 = vld [vmem:[%s2210_s1 + $0x264] ss:$8 sps:$4 sm:$0xff]  }
  0x18   :  { %672 = vmatprep.subr.bf16.mxu0 %v1491_v23  ;;  %712 = vmatpush1.bf16.msra.mxu1 %v1490_v24  ;;  %v1602_v9 = vld [vmem:[%s2210_s1 + $0x304] ss:$8 sps:$4 sm:$0xff]   ;;  %v1600_v10 = vld [vmem:[%s2210_s1 + $0x300] ss:$8 sps:$4 sm:$0xff]   ;;  %v1960_v12 = vld [vmem:[%s2209_s0 + $0x10] sm:$0xff] }
  0x19   :  { %713 = vmatprep.subr.bf16.mxu1 %v1494_v25  ;;  %v1558_v11 = vld [vmem:[%s2210_s1 + $0x260] ss:$8 sps:$4 sm:$0xff]   ;;  %v1563_v13 = vld [vmem:[%s2210_s1 + $0x254] ss:$8 sps:$4 sm:$0xff]   ;;  %v1281_v14 = vcombine.high %v1960_v12, %v1960_v12  ;;  %v1561_v15 = vld [vmem:[%s2210_s1 + $0x250] ss:$8 sps:$4 sm:$0xff]  }
  0x1a   :  { %v1566_v17 = vld [vmem:[%s2210_s1 + $0x244] ss:$8 sps:$4 sm:$0xff]   ;;  %v1606_v18 = vld [vmem:[%s2209_s0 + $0x18] ss:$0 sps:$4 sm:$0xff]   ;;  %v1564_v19 = vld [vmem:[%s2210_s1 + $0x240] ss:$8 sps:$4 sm:$0xff]  }
  0x1b   :  { %673 = vmatpush1.bf16.msra.mxu0 %v1493_v26  ;;  %v1569_v20 = vld [vmem:[%s2210_s1 + $0x234] ss:$8 sps:$4 sm:$0xff]   ;;  %v1567_v21 = vld [vmem:[%s2210_s1 + $0x230] ss:$8 sps:$4 sm:$0xff]   ;;  %v1572_v22 = vld [vmem:[%s2210_s1 + $0x224] ss:$8 sps:$4 sm:$0xff]  }
  0x1c   :  { %674 = vmatprep.subr.bf16.mxu0 %v1497_v27  ;;  %714 = vmatpush1.bf16.msra.mxu1 %v1496_v28  ;;  %v1570_v23 = vld [vmem:[%s2210_s1 + $0x220] ss:$8 sps:$4 sm:$0xff]   ;;  %v1575_v24 = vld [vmem:[%s2210_s1 + $0x214] ss:$8 sps:$4 sm:$0xff]   ;;  %v1573_v25 = vld [vmem:[%s2210_s1 + $0x210] ss:$8 sps:$4 sm:$0xff]  }
  0x1d   :  { %715 = vmatprep.subr.bf16.mxu1 %v1500_v29  ;;  %v1578_v26 = vld [vmem:[%s2210_s1 + $0x204] ss:$8 sps:$4 sm:$0xff]  }
  0x1f   :  { %675 = vmatpush1.bf16.msra.mxu0 %v1499_v30 }
  0x20   :  { %676 = vmatprep.subr.bf16.mxu0 %v1503_v31  ;;  %716 = vmatpush1.bf16.msra.mxu1 %v1502_v32 }
  0x21   :  { %717 = vmatprep.subr.bf16.mxu1 %v1506_v33 }
  0x23   :  { %677 = vmatpush2.bf16.msra.mxu0 %v1505_v34 }
  0x24   :  { %678 = vmatprep.subr.bf16.mxu0 %v1509_v35  ;;  %718 = vmatpush2.bf16.msra.mxu1 %v1508_v36 }
  0x25   :  { %719 = vmatprep.subr.bf16.mxu1 %v1512_v37 }
  0x27   :  { %679 = vmatpush2.bf16.msra.mxu0 %v1511_v38 }
  0x28   :  { %680 = vmatprep.subr.bf16.mxu0 %v1515_v39  ;;  %720 = vmatpush2.bf16.msra.mxu1 %v1514_v40 }
  0x29   :  { %721 = vmatprep.subr.bf16.mxu1 %v1518_v41 }
  0x2b   :  { %681 = vmatpush2.bf16.msra.mxu0 %v1517_v42 }
  0x2c   :  { %682 = vmatprep.subr.bf16.mxu0 %v1521_v43  ;;  %722 = vmatpush2.bf16.msra.mxu1 %v1520_v44 }
  0x2d   :  { %723 = vmatprep.subr.bf16.mxu1 %v1524_v45 }
  0x2f   :  { %683 = vmatpush2.bf16.msra.mxu0 %v1523_v47 }
  0x30   :  { %684 = vmatprep.subr.bf16.mxu0 %v1527_v49  ;;  %724 = vmatpush2.bf16.msra.mxu1 %v1526_v51 }
  0x31   :  { %725 = vmatprep.subr.bf16.mxu1 %v1530_v53 }
  0x33   :  { %685 = vmatpush2.bf16.msra.mxu0 %v1529_v54 }
  0x34   :  { %686 = vmatprep.subr.bf16.mxu0 %v1533_v55  ;;  %726 = vmatpush2.bf16.msra.mxu1 %v1532_v56 }
  0x35   :  { %727 = vmatprep.subr.bf16.mxu1 %v1536_v57 }
  0x37   :  { %687 = vmatpush2.bf16.msra.mxu0 %v1535_v58 }
  0x38   :  { %688 = vmatprep.subr.bf16.mxu0 %v1539_v59  ;;  %728 = vmatpush2.bf16.msra.mxu1 %v1538_v60 }
  0x39   :  { %729 = vmatprep.subr.bf16.mxu1 %v1542_v61 }
  0x3b   :  { %689 = vmatpush2.bf16.msra.mxu0 %v1541_v62 }
  0x3c   :  { %690 = vmatprep.subr.bf16.mxu0 %v1545_v63  ;;  %730 = vmatpush2.bf16.msra.mxu1 %v1544_v0 }
  0x3d   :  { %731 = vmatprep.subr.bf16.mxu1 %v1548_v1 }
  0x3f   :  { %691 = vmatpush2.bf16.msra.mxu0 %v1547_v2 }
  0x40   :  { %742 = vmatprep.subr.bf16.mxu0 %v1555_v3  ;;  %732 = vmatpush2.bf16.msra.mxu1 %v1552_v4 }
  0x41   :  { %797 = vmatprep.subr.bf16.mxu1 %v1602_v9 }
  0x42   :  { %693 = vmatmul.mubr.bf16.vlgmr.msra.gmra.mxu0 %v1276_v5 }
  0x43   :  { %743 = vmatpush1.bf16.msra.mxu0 %v1553_v6  ;;  %734 = vmatmul.mubr.bf16.vlgmr.msra.gmra.mxu1 %v1278_v7 }
  0x44   :  { %744 = vmatprep.subr.bf16.mxu0 %v1560_v8  ;;  %798 = vmatpush1.bf16.msra.mxu1 %v1600_v10 }
  0x45   :  { %815 = vmatprep.mubr.bf16.mxu1 %v1699_v16  ;;  %774 = vmatprep.mubr.bf16.mxu0 %v1281_v14 }
  0x47   :  { %745 = vmatpush1.bf16.msra.mxu0 %v1558_v11 }
  0x48   :  { %746 = vmatprep.subr.bf16.mxu0 %v1563_v13 }
  0x4b   :  { %747 = vmatpush1.bf16.msra.mxu0 %v1561_v15  ;;  %1381 = vmatmul.mubr.msk.bf16.vlgmr.msra.gmra.mxu1 %vm656_vm0, %v1606_v18 }
  0x4c   :  { %748 = vmatprep.subr.bf16.mxu0 %v1566_v17 }
  0x4f   :  { %749 = vmatpush1.bf16.msra.mxu0 %v1564_v19 }
  0x50   :  { %750 = vmatprep.subr.bf16.mxu0 %v1569_v20 }
  0x53   :  { %751 = vmatpush1.bf16.msra.mxu0 %v1567_v21 }
  0x54   :  { %752 = vmatprep.subr.bf16.mxu0 %v1572_v22 }
  0x57   :  { %753 = vmatpush1.bf16.msra.mxu0 %v1570_v23 }
  0x58   :  { %754 = vmatprep.subr.bf16.mxu0 %v1575_v24 }
  0x59   :  { %12 = vsyncpa [#allocation3], 0  ;;  %v1576_v27 = vld [vmem:[%s2210_s1 + $0x200] ss:$8 sps:$4 sm:$0xff]   ;;  %v1581_v28 = vld [vmem:[%s2210_s1 + $0x2f4] ss:$8 sps:$4 sm:$0xff]   ;;  %v1280_v44 = vcombine.low %v1960_v12, %v1960_v12 }
  0x5a   :  { %v1579_v29 = vld [vmem:[%s2210_s1 + $0x2f0] ss:$8 sps:$4 sm:$0xff]   ;;  %v1584_v30 = vld [vmem:[%s2210_s1 + $0x2e4] ss:$8 sps:$4 sm:$0xff]   ;;  %v1582_v31 = vld [vmem:[%s2210_s1 + $0x2e0] ss:$8 sps:$4 sm:$0xff]  }
  0x5b   :  { %755 = vmatpush1.bf16.msra.mxu0 %v1573_v25  ;;  %v1587_v32 = vld [vmem:[%s2210_s1 + $0x2d4] ss:$8 sps:$4 sm:$0xff]   ;;  %v1585_v33 = vld [vmem:[%s2210_s1 + $0x2d0] ss:$8 sps:$4 sm:$0xff]   ;;  %v1590_v34 = vld [vmem:[%s2210_s1 + $0x2c4] ss:$8 sps:$4 sm:$0xff]  }
  0x5c   :  { %756 = vmatprep.subr.bf16.mxu0 %v1578_v26  ;;  %v1588_v35 = vld [vmem:[%s2210_s1 + $0x2c0] ss:$8 sps:$4 sm:$0xff]   ;;  %v1593_v36 = vld [vmem:[%s2210_s1 + $0x2b4] ss:$8 sps:$4 sm:$0xff]   ;;  %v1591_v37 = vld [vmem:[%s2210_s1 + $0x2b0] ss:$8 sps:$4 sm:$0xff]  }
  0x5d   :  { %v1596_v38 = vld [vmem:[%s2210_s1 + $0x2a4] ss:$8 sps:$4 sm:$0xff]   ;;  %v1594_v39 = vld [vmem:[%s2210_s1 + $0x2a0] ss:$8 sps:$4 sm:$0xff]   ;;  %v1599_v40 = vld [vmem:[%s2210_s1 + $0x294] ss:$8 sps:$4 sm:$0xff]  }
  0x5e   :  { %v1597_v41 = vld [vmem:[%s2210_s1 + $0x290] ss:$8 sps:$4 sm:$0xff]   ;;  %v1605_v42 = vld [vmem:[%s2210_s1 + $0x284] ss:$8 sps:$4 sm:$0xff]   ;;  %v1603_v43 = vld [vmem:[%s2210_s1 + $0x280] ss:$8 sps:$4 sm:$0xff]  }
  0x5f   :  { %757 = vmatpush1.bf16.msra.mxu0 %v1576_v27  ;;  %v1609_v45 = vld [vmem:[%s2212_s3 + $0x70] ss:$8 sps:$4 sm:$0xff]   ;;  %v1611_v46 = vld [vmem:[%s2212_s3 + $0x74] ss:$8 sps:$4 sm:$0xff]   ;;  %v1614_v47 = vld [vmem:[%s2212_s3 + $0x64] ss:$8 sps:$4 sm:$0xff]  }
  0x60   :  { %758 = vmatprep.subr.bf16.mxu0 %v1581_v28  ;;  %1032 = vmatprep.subr.bf16.mxu1 %v1611_v46  ;;  %v1612_v48 = vld [vmem:[%s2212_s3 + $0x60] ss:$8 sps:$4 sm:$0xff]   ;;  %v1617_v49 = vld [vmem:[%s2212_s3 + $0x54] ss:$8 sps:$4 sm:$0xff]   ;;  %v1615_v50 = vld [vmem:[%s2212_s3 + $0x50] ss:$8 sps:$4 sm:$0xff]  }
  0x61   :  { %1033 = vmatpush1.bf16.msra.mxu1 %v1609_v45  ;;  %v1620_v51 = vld [vmem:[%s2212_s3 + $0x44] ss:$8 sps:$4 sm:$0xff]   ;;  %v1618_v52 = vld [vmem:[%s2212_s3 + $0x40] ss:$8 sps:$4 sm:$0xff]   ;;  %v1623_v53 = vld [vmem:[%s2212_s3 + $0x34] ss:$8 sps:$4 sm:$0xff]  }
  0x62   :  { %1034 = vmatprep.subr.bf16.mxu1 %v1614_v47  ;;  %v1621_v54 = vld [vmem:[%s2212_s3 + $0x30] ss:$8 sps:$4 sm:$0xff]   ;;  %v1626_v55 = vld [vmem:[%s2212_s3 + $0x24] ss:$8 sps:$4 sm:$0xff]   ;;  %v1624_v56 = vld [vmem:[%s2212_s3 + $0x20] ss:$8 sps:$4 sm:$0xff]  }
  0x63   :  { %759 = vmatpush2.bf16.msra.mxu0 %v1579_v29  ;;  %v1629_v57 = vld [vmem:[%s2212_s3 + $0x14] ss:$8 sps:$4 sm:$0xff]   ;;  %v1627_v58 = vld [vmem:[%s2212_s3 + $0x10] ss:$8 sps:$4 sm:$0xff]   ;;  %v1632_v59 = vld [vmem:[%s2212_s3 + $0x4] ss:$8 sps:$4 sm:$0xff]  }
  0x64   :  { %760 = vmatprep.subr.bf16.mxu0 %v1584_v30  ;;  %v1630_v60 = vld [vmem:[%s2212_s3] ss:$8 sps:$4 sm:$0xff]   ;;  %v1635_v61 = vld [vmem:[%s2212_s3 + $0xf4] ss:$8 sps:$4 sm:$0xff]   ;;  %v1633_v62 = vld [vmem:[%s2212_s3 + $0xf0] ss:$8 sps:$4 sm:$0xff]  }
  0x65   :  { %1035 = vmatpush1.bf16.msra.mxu1 %v1612_v48  ;;  %v1638_v63 = vld [vmem:[%s2212_s3 + $0xe4] ss:$8 sps:$4 sm:$0xff]   ;;  %v1636_v0 = vld [vmem:[%s2212_s3 + $0xe0] ss:$8 sps:$4 sm:$0xff]   ;;  %v1641_v1 = vld [vmem:[%s2212_s3 + $0xd4] ss:$8 sps:$4 sm:$0xff]  }
  0x66   :  { %1036 = vmatprep.subr.bf16.mxu1 %v1617_v49  ;;  %v1639_v2 = vld [vmem:[%s2212_s3 + $0xd0] ss:$8 sps:$4 sm:$0xff]   ;;  %v1644_v3 = vld [vmem:[%s2212_s3 + $0xc4] ss:$8 sps:$4 sm:$0xff]   ;;  %v1642_v4 = vld [vmem:[%s2212_s3 + $0xc0] ss:$8 sps:$4 sm:$0xff]  }
  0x67   :  { %761 = vmatpush2.bf16.msra.mxu0 %v1582_v31  ;;  %v1647_v5 = vld [vmem:[%s2212_s3 + $0xb4] ss:$8 sps:$4 sm:$0xff]   ;;  %v1645_v6 = vld [vmem:[%s2212_s3 + $0xb0] ss:$8 sps:$4 sm:$0xff]   ;;  %v1650_v7 = vld [vmem:[%s2212_s3 + $0xa4] ss:$8 sps:$4 sm:$0xff]  }
  0x68   :  { %762 = vmatprep.subr.bf16.mxu0 %v1587_v32  ;;  %v1648_v8 = vld [vmem:[%s2212_s3 + $0xa0] ss:$8 sps:$4 sm:$0xff]   ;;  %v1653_v9 = vld [vmem:[%s2212_s3 + $0x94] ss:$8 sps:$4 sm:$0xff]   ;;  %v1651_v10 = vld [vmem:[%s2212_s3 + $0x90] ss:$8 sps:$4 sm:$0xff]  }
  0x69   :  { %1037 = vmatpush1.bf16.msra.mxu1 %v1615_v50  ;;  %v1656_v11 = vld [vmem:[%s2212_s3 + $0x84] ss:$8 sps:$4 sm:$0xff]   ;;  %v1654_v12 = vld [vmem:[%s2212_s3 + $0x80] ss:$8 sps:$4 sm:$0xff]   ;;  %v1657_v13 = vld [vmem:[%s2214_s5 + $0x78] sm:$0xff]  }
  0x6a   :  { %1038 = vmatprep.subr.bf16.mxu1 %v1620_v51  ;;  %v1658_v14 = vld [vmem:[%s2214_s5 + $0x38] sm:$0xff]   ;;  %v1659_v15 = vld [vmem:[%s2214_s5 + $0x70] sm:$0xff]   ;;  %v1661_v17 = vld [vmem:[%s2214_s5 + $0x68] sm:$0xff]  }
  0x6b   :  { %763 = vmatpush2.bf16.msra.mxu0 %v1585_v33  ;;  %v1660_v16 = vld [vmem:[%s2214_s5 + $0x30] sm:$0xff]   ;;  %v1662_v18 = vld [vmem:[%s2214_s5 + $0x28] sm:$0xff]   ;;  %v1663_v19 = vld [vmem:[%s2214_s5 + $0x60] sm:$0xff]  }
  0x6c   :  { %764 = vmatprep.subr.bf16.mxu0 %v1590_v34  ;;  %v1664_v20 = vld [vmem:[%s2214_s5 + $0x20] sm:$0xff]   ;;  %v1665_v21 = vld [vmem:[%s2214_s5 + $0x58] sm:$0xff]   ;;  %v1667_v23 = vld [vmem:[%s2214_s5 + $0x50] sm:$0xff]  }
  0x6d   :  { %1039 = vmatpush1.bf16.msra.mxu1 %v1618_v52  ;;  %v1666_v22 = vld [vmem:[%s2214_s5 + $0x18] sm:$0xff]   ;;  %v1668_v24 = vld [vmem:[%s2214_s5 + $0x10] sm:$0xff]  }
  0x6e   :  { %1040 = vmatprep.subr.bf16.mxu1 %v1623_v53 }
  0x6f   :  { %765 = vmatpush2.bf16.msra.mxu0 %v1588_v35 }
  0x70   :  { %766 = vmatprep.subr.bf16.mxu0 %v1593_v36 }
  0x71   :  { %1041 = vmatpush1.bf16.msra.mxu1 %v1621_v54 }
  0x72   :  { %1042 = vmatprep.subr.bf16.mxu1 %v1626_v55 }
  0x73   :  { %767 = vmatpush2.bf16.msra.mxu0 %v1591_v37  ;;  %v132_v37 = vlaneseq }
  0x74   :  { %768 = vmatprep.subr.bf16.mxu0 %v1596_v38 }
  0x75   :  { %1043 = vmatpush1.bf16.msra.mxu1 %v1624_v56  ;;  %v133_v38 = vshrl.u32 %v132_v37, 7 }
  0x76   :  { %1044 = vmatprep.subr.bf16.mxu1 %v1629_v57 }
  0x77   :  { %769 = vmatpush2.bf16.msra.mxu0 %v1594_v39  ;;  %v134_v39 = vsub.s32 0, %v133_v38 }
  0x78   :  { %770 = vmatprep.subr.bf16.mxu0 %v1599_v40  ;;  %v130_v40 = vld [vmem:[%s2211_s2] sm:$0x3] }
  0x79   :  { %1045 = vmatpush1.bf16.msra.mxu1 %v1627_v58 }
  0x7a   :  { %1046 = vmatprep.subr.bf16.mxu1 %v1632_v59 }
  0x7b   :  { %771 = vmatpush2.bf16.msra.mxu0 %v1597_v41  ;;  %v138_v41 = vsub.s32 1, %v133_v38 }
  0x7c   :  { %772 = vmatprep.subr.bf16.mxu0 %v1605_v42  ;;  %v135_v42 = vrot.slane %v130_v40, %v134_v39 }
  0x7d   :  { %1047 = vmatpush1.bf16.msra.mxu1 %v1630_v60  ;;  %v1669_v60 = vld [vmem:[%s2214_s5 + $0x48] sm:$0xff]  }
  0x7e   :  { %1048 = vmatprep.subr.bf16.mxu1 %v1635_v61  ;;  %v1670_v61 = vld [vmem:[%s2214_s5 + $0x8] sm:$0xff]  }
  0x7f   :  { %773 = vmatpush2.bf16.msra.mxu0 %v1603_v43  ;;  %v139_v43 = vrot.slane %v130_v40, %v138_v41 }
  0x80   :  { %1431 = vmatprep.subr.bf16.mxu0 %v1657_v13 }
  0x81   :  { %1049 = vmatpush2.bf16.msra.mxu1 %v1633_v62  ;;  %v1671_v62 = vld [vmem:[%s2214_s5 + $0x40] sm:$0xff]  }
  0x82   :  { %775 = vmatmul.mubr.bf16.vlgmr.msra.gmra.mxu0 %v1280_v44  ;;  %1050 = vmatprep.subr.bf16.mxu1 %v1638_v63  ;;  %v1672_v63 = vld [vmem:[%s2214_s5] sm:$0xff]  }
  0x83   :  { %1432 = vmatpush3.bf16.msra.mxu0 %v1658_v14 }
  0x84   :  { %1433 = vmatprep.subr.bf16.mxu0 %v1659_v15  ;;  %v1414_v15 = vld [vmem:[%s2215_s6] ss:$0 sm:$0xff] }
  0x85   :  { %1051 = vmatpush2.bf16.msra.mxu1 %v1636_v0  ;;  %v860_v0 = vld [vmem:[%s2213_s4] sm:$0x3]  ;;  %s1700_s4 = smov [#allocation2]  }
  0x86   :  { %1052 = vmatprep.subr.bf16.mxu1 %v1641_v1  ;;  %v865_v1 = vrot.slane %v860_v0, %v134_v39  ;;  %s1268_s17 = sshll.u32 %s1700_s4, 4  ;;  %s1269_s17 = int_to_ptr.vmem [resolvable:$true] %s1268_s17 }
  0x87   :  { %1434 = vmatpush3.bf16.msra.mxu0 %v1660_v16  ;;  %s1677_s6 = scalar_lea.vmem %s1269_s17, 128  ;;  %p1682_p1 = scmp.lt.s32.totalorder %s1269_s17, %s1269_s17 }
  0x88   :  { %1435 = vmatprep.subr.bf16.mxu0 %v1661_v17  ;;  %p1678_p0 = scmp.ne.s32.totalorder %s1269_s17, %s1677_s6  ;;  %p1683_p2 = scmp.lt.s32.totalorder %s1677_s6, %s1677_s6 }
  0x89   :  { %1053 = vmatpush2.bf16.msra.mxu1 %v1639_v2  ;;  %v869_v2 = vrot.slane %v860_v0, %v138_v41 }
  0x8a   :  { %1054 = vmatprep.subr.bf16.mxu1 %v1644_v3  ;;  %p1684_p3 = por %p1683_p2, %p1682_p1 }
  0x8b   :  { %1436 = vmatpush3.bf16.msra.mxu0 %v1662_v18 }
  0x8c   :  { %1437 = vmatprep.subr.bf16.mxu0 %v1663_v19  ;;  %p1685_p4 = pnand %p1684_p3, %p1678_p0 }
  0x8d   :  { %1055 = vmatpush2.bf16.msra.mxu1 %v1642_v4 }
  0x8e   :  { %1056 = vmatprep.subr.bf16.mxu1 %v1647_v5 }
  0x8f   :  { %1438 = vmatpush3.bf16.msra.mxu0 %v1664_v20 }
  0x90   :  { %1439 = vmatprep.subr.bf16.mxu0 %v1665_v21 }
  0x91   :  { %1057 = vmatpush2.bf16.msra.mxu1 %v1645_v6 }
  0x92   :  { %1058 = vmatprep.subr.bf16.mxu1 %v1650_v7 }
  0x93   :  { %1440 = vmatpush3.bf16.msra.mxu0 %v1666_v22 }
  0x94   :  { %1441 = vmatprep.subr.bf16.mxu0 %v1667_v23 }
  0x95   :  { %1059 = vmatpush2.bf16.msra.mxu1 %v1648_v8 }
  0x96   :  { %1060 = vmatprep.subr.bf16.mxu1 %v1653_v9 }
  0x97   :  { %1442 = vmatpush3.bf16.msra.mxu0 %v1668_v24 }
  0x98   :  { %1443 = vmatprep.subr.bf16.mxu0 %v1669_v60 }
  0x99   :  { %1061 = vmatpush2.bf16.msra.mxu1 %v1651_v10 }
  0x9a   :  { %1062 = vmatprep.subr.bf16.mxu1 %v1656_v11 }
  0x9b   :  { %1444 = vmatpush3.bf16.msra.mxu0 %v1670_v61 }
  0x9c   :  { %1445 = vmatprep.subr.bf16.mxu0 %v1671_v62 }
  0x9d   :  { %1063 = vmatpush2.bf16.msra.mxu1 %v1654_v12 }
  0x9f   :  { %1446 = vmatpush3.bf16.msra.mxu0 %v1672_v63 }
 0x102   :  { %v694_v25 = vpop.f32.mrf.mxu0 }
 0x103   :  { %v735_v27 = vpop.f32.mrf.mxu1  ;;  %v695_v44 = vadd.f32 %v694_v25, %v135_v42 }
 0x104   :  { %v696_v26 = vpop.f32.mrf.mxu0 }
 0x105   :  { %v737_v29 = vpop.f32.mrf.mxu1  ;;  %v697_v45 = vadd.f32 %v696_v26, %v139_v43  ;;  %v736_v46 = vadd.f32 %v735_v27, %v695_v44 }
 0x106   :  { %v698_v28 = vpop.f32.mrf.mxu0 }
 0x107   :  { %v739_v31 = vpop.f32.mrf.mxu1  ;;  %v738_v48 = vadd.f32 %v737_v29, %v697_v45 }
 0x108   :  { %v699_v30 = vpop.f32.mrf.mxu0 }
 0x109   :  { %v740_v32 = vpop.f32.mrf.mxu1 }
 0x10b   :  { %v817_v33 = vpop.f32.mrf.mxu1 }
 0x10d   :  { %v819_v34 = vpop.f32.mrf.mxu1 }
 0x10f   :  { %v821_v35 = vpop.f32.mrf.mxu1 }
 0x111   :  { %v822_v36 = vpop.f32.mrf.mxu1 }
 0x142   :  { %v776_v47 = vpop.f32.mrf.mxu0 }
 0x143   :  { %v777_v49 = vadd.f32 %v776_v47, %v736_v46 }
 0x144   :  { %v778_v50 = vpop.f32.mrf.mxu0 }
 0x145   :  { %v818_v51 = vadd.f32 %v817_v33, %v777_v49  ;;  %v779_v52 = vadd.f32 %v778_v50, %v738_v48 }
 0x146   :  { %v780_v53 = vpop.f32.mrf.mxu0 }
 0x147   :  { %v820_v54 = vadd.f32 %v819_v34, %v779_v52  ;;  %v824_v55 = vmax.f32 %v818_v51, 0.0 }
 0x148   :  { %v781_v56 = vpop.f32.mrf.mxu0 }
 0x149   :  { %v825_v57 = vmax.f32 %v820_v54, 0.0  ;;  %v826_v59 = vpack.c.bf16 %v824_v55, %v824_v55 }
 0x14b   :  { %v827_v58 = vpack.c.bf16 %v825_v57, %v825_v57 }
 0x14d   :  { %1064 = vmatprep.mubr.bf16.mxu1 %v827_v58 }
 0x14e   :  { %1065 = vmatmul.mubr.bf16.vlgmr.msra.gmra.mxu1 %v826_v59 }
 0x20e   :  { %v1066_v3 = vpop.f32.mrf.mxu1 }
 0x20f   :  { %v1067_v4 = vadd.f32 %v1066_v3, %v865_v1 }
 0x210   :  { %v1068_v5 = vpop.f32.mrf.mxu1 }
 0x211   :  { %v1069_v6 = vadd.f32 %v1068_v5, %v869_v2  ;;  %v1073_v7 = vmax.f32 %v1067_v4, 0.0 }
 0x212   :  { %v1070_v8 = vpop.f32.mrf.mxu1 }
 0x213   :  { %v1074_v9 = vmax.f32 %v1069_v6, 0.0  ;;  %v1075_v12 = vpack.c.bf16 %v1073_v7, %v1073_v7 }
 0x214   :  { %v1071_v10 = vpop.f32.mrf.mxu1 }
 0x215   :  { %v1076_v11 = vpack.c.bf16 %v1074_v9, %v1074_v9 }
 0x217   :  { %1244 = vmatprep.mubr.bf16.mxu0 %v1076_v11 }
 0x218   :  { %1245 = vmatmul.mubr.bf16.vlgmr.msra.gmra.mxu0 %v1075_v12 }
 0x2d8   :  { %v1447_v13 = vpop.f32.mrf.mxu0 }
 0x2da   :  { %v1448_v14 = vpop.f32.mrf.mxu0 }
 0x2db   :  { %v1449_v16 = vadd.f32 %v1448_v14, %v1447_v13 }
 0x2dc   :  { %v1450_v17 = vpop.f32.mrf.mxu0 }
 0x2dd   :  { %v1247_v18 = vadd.f32 %v1449_v16, %v1414_v15 }
 0x2de   :  { %v1451_v19 = vpop.f32.mrf.mxu0 }
 0x2df   :  { %1252 = vmax.xlane.f32.xlu0 %v1247_v18 }
 0x368   :  { %v1253_v20 = vpop.xlane.xlu0 %1252 }
 0x369   :  { %v1254_v21 = vsub.f32 %v1247_v18, %v1253_v20 }
 0x36b   :  { %v1255_v22 = vmul.f32 1.442695, %v1254_v21 }
 0x36d   :  { %1673 = vpow2.f32 %v1255_v22 }
 0x37a   :  { %v1674_v23 = vpop.eup %1673 }
 0x37b   :  { %1257 = vadd.xlane.f32.xlu0 %v1674_v23 }
 0x404   :  { %v1258_v24 = vpop.xlane.xlu0 %1257 }
 0x405   :  { %1675 = vrcp.f32 %v1258_v24 }
 0x412   :  { %v1676_v25 = vpop.eup %1675 }
 0x413   :  { %v1260_v26 = vmul.f32 %v1676_v25, %v1674_v23 }
 0x415   :  { %1261 = vst [vmem:[#allocation2] sm:$0xff] %v1260_v26 }
 0x416   :  { %1688 = shalt.err (!%p1685_p4)
}
 0x417   :  { %1271 = dma.vmem_to_hbm [thread:$0]  %s1269_s17, 128, %s2216_s7, [#allocation3]  }
 0x418   :  { %1697 = dma.done.wait [#allocation3], 128  }
 0x419   :  { %1698 = vsyncadd [#allocation3], 4294967168 }
 0x41a   :  { %1275 = vsyncpa [#allocation3], 1 }

</bundles_post_ra>
